<compile_context>
chip_gen: v6e
topology: v6e:2x2x1
jax: 0.10.0
libtpu: 0.0.40
codegen_flags: <defaults>
</compile_context>

<pallas_src>
import functools

import jax
import jax.numpy as jnp
from jax.experimental import pallas as pl
from jax.experimental.pallas import tpu as pltpu


# ------------------------------ kernel ------------------------------------ #

def pathway_kernel(x_ref, w1_ref, b1_ref, ws12_ref, bs12_ref, wo_ref, bo_ref,
                   *out_refs, sfc_size, split_outputs):
    mxu_dtype = w1_ref.dtype   # bf16 by default; f32 also works

    # fc1 + ReLU (f32 MXU accumulation, f32 element-wise)
    h = jnp.dot(x_ref[...], w1_ref[...], preferred_element_type=jnp.float32)
    h = jnp.maximum(h + b1_ref[...], 0.0)

    # fused sfc1|sfc2 + ReLU: one matmul over the concatenated [hidden, 2*sfc]
    o12 = jnp.dot(h.astype(mxu_dtype), ws12_ref[...],
                  preferred_element_type=jnp.float32)
    o12 = jnp.maximum(o12 + bs12_ref[...], 0.0)

    o1 = o12[:, :sfc_size]

    # output head on out1 (no ReLU, matches the PyTorch module)
    head = (jnp.dot(o1.astype(mxu_dtype), wo_ref[...],
                    preferred_element_type=jnp.float32) + bo_ref[...])

    if split_outputs:
        # Lane-dense feature dims (multiples of 128): write the three results
        # directly — no wrapper-side split / HBM round-trip of the big tensor.
        out_ref, out1_ref, out2_ref = out_refs
        out_ref[...] = head.astype(out_ref.dtype)
        out1_ref[...] = o1.astype(out1_ref.dtype)
        out2_ref[...] = o12[:, sfc_size:].astype(out2_ref.dtype)
    else:
        # Small feature dims: pack everything into a single slab so the
        # per-step output DMA is one unmasked stream; split in the wrapper.
        slab_ref, = out_refs
        slab_ref[...] = jnp.concatenate([head, o12], axis=1).astype(slab_ref.dtype)


# ------------------------------ wrapper ------------------------------------ #

def _round_up(n, m):
    return ((n + m - 1) // m) * m


def _vmem_budget_and_limit():
    """Generation-aware (budget, vmem_limit_bytes)."""
    cap = 64 * 1024 * 1024        # conservative default (v7x per-TC VMEM)
    try:
        cap = int(getattr(pltpu.get_tpu_info(), "vmem_capacity_bytes", cap))
    except Exception:
        pass
    if cap >= 100 * 1024 * 1024:  # v5e / v6e: 128 MiB physical
        return 96 * 1024 * 1024, 112 * 1024 * 1024
    return 40 * 1024 * 1024, 48 * 1024 * 1024     # v7x: 64 MiB physical


def _choose_batch_tile(B, bytes_per_row, weight_bytes, vmem_budget):
    """Largest sublane-aligned batch tile that fits the VMEM budget.

    bytes_per_row already includes double-buffering of the per-tile I/O and
    the f32 intermediates; weight_bytes already includes the double-buffered
    copy of the resident weight/bias blocks.
    """
    def fits(t):
        return weight_bytes + t * bytes_per_row <= vmem_budget

    if B <= 8:
        return B                      # single full-batch tile (block == full dim)
    # Keep >= 2 grid steps so the "parallel" batch axis can shard across both
    # v7x TensorCores; tile must be a multiple of 8 (sublane constraint).
    cap = min(1024, _round_up(pl.cdiv(B, 2), 8))
    for t in (1024, 512, 256, 128, 64, 32, 16, 8):
        if t <= cap and fits(t):
            return t
    return 8


def nn_pathway_forward(x, params, *, sfc_size, mxu_dtype=jnp.bfloat16,
                       out_dtype=jnp.float32):
    """x: [B, input_size]. params: output of prepare_params (fused/cast).

    out_dtype=jnp.bfloat16 halves the dominant HBM write traffic (useful on
    v5e) if the consumer tolerates bf16 outputs; default keeps f32 semantics.
    """
    B, input_size = x.shape
    hidden_size = params["w1"].shape[1]
    out_size = params["wo"].shape[1]
    sfc2 = 2 * sfc_size

    x = x.astype(mxu_dtype)                        # halve x HBM/VMEM traffic

    vmem_budget, vmem_limit = _vmem_budget_and_limit()

    itemsize = jnp.dtype(mxu_dtype).itemsize
    out_itemsize = jnp.dtype(out_dtype).itemsize
    # Per-row VMEM: double-buffered x tile + f32 intermediates/casts +
    # double-buffered output tile(s).
    bytes_per_row = (
        2 * input_size * itemsize                    # x tile (x2 buffers)
        + hidden_size * (4 + itemsize)               # h f32 + bf16 re-cast
        + sfc2 * 4 + sfc_size * itemsize             # o12 f32 + o1 bf16 re-cast
        + out_size * 4                               # head f32
        + 2 * (out_size + sfc2) * out_itemsize       # output tile(s) (x2 buffers)
    )
    # Resident weights/biases are still double-buffered by the pipeline.
    weight_bytes = 2 * (
        (input_size * hidden_size + hidden_size * sfc2 + sfc_size * out_size)
        * itemsize
        + (hidden_size + sfc2 + out_size) * 4
    )
    tile_b = _choose_batch_tile(B, bytes_per_row, weight_bytes, vmem_budget)

    # Pad ragged batches up to a tile multiple; slice results back below.
    B_pad = _round_up(B, tile_b)
    if B_pad != B:
        x = jnp.pad(x, ((0, B_pad - B), (0, 0)))
    grid = (B_pad // tile_b,)

    # Lane-dense outputs -> write out/out1/out2 directly; otherwise one slab.
    split_outputs = (sfc_size % 128 == 0) and (out_size % 128 == 0)

    def resident(shape):   # weights/biases: constant block index, stay in VMEM
        return pl.BlockSpec(shape, lambda i: (0, 0))

    in_specs = [
        pl.BlockSpec((tile_b, input_size), lambda i: (i, 0)),   # x (batch-tiled)
        resident((input_size, hidden_size)),                    # w1
        resident((1, hidden_size)),                             # b1
        resident((hidden_size, sfc2)),                          # ws12 (fused)
        resident((1, sfc2)),                                    # bs12 (fused)
        resident((sfc_size, out_size)),                         # wo
        resident((1, out_size)),                                # bo
    ]

    if split_outputs:
        out_specs = (
            pl.BlockSpec((tile_b, out_size), lambda i: (i, 0)),
            pl.BlockSpec((tile_b, sfc_size), lambda i: (i, 0)),
            pl.BlockSpec((tile_b, sfc_size), lambda i: (i, 0)),
        )
        out_shapes = (
            jax.ShapeDtypeStruct((B_pad, out_size), out_dtype),
            jax.ShapeDtypeStruct((B_pad, sfc_size), out_dtype),
            jax.ShapeDtypeStruct((B_pad, sfc_size), out_dtype),
        )
    else:
        slab_w = out_size + sfc2
        out_specs = pl.BlockSpec((tile_b, slab_w), lambda i: (i, 0))
        out_shapes = jax.ShapeDtypeStruct((B_pad, slab_w), out_dtype)

    result = pl.pallas_call(
        functools.partial(pathway_kernel, sfc_size=sfc_size,
                          split_outputs=split_outputs),
        out_shape=out_shapes,
        grid=grid,
        in_specs=in_specs,
        out_specs=out_specs,
        compiler_params=pltpu.CompilerParams(
            dimension_semantics=("parallel",),
            vmem_limit_bytes=vmem_limit,
        ),
    )(
        x,
        params["w1"], params["b1"],
        params["ws12"], params["bs12"],
        params["wo"], params["bo"],
    )

    if split_outputs:
        out, out1, out2 = result
    else:
        slab = result
        out = slab[:, :out_size]
        out1 = slab[:, out_size:out_size + sfc_size]
        out2 = slab[:, out_size + sfc_size:]

    if B_pad != B:
        out, out1, out2 = out[:B], out1[:B], out2[:B]

    # val1/val2 computed here (fused with the slicing by XLA) instead of as
    # tiny per-step kernel outputs.
    val1 = jnp.sum(out1.astype(jnp.float32))
    val2 = jnp.sum(out2.astype(jnp.float32))
    return out, val1, val2, out1, out2


# --------------------------- params & references --------------------------- #

def init_params(key, input_size, hidden_size, sfc_size, output_size):
    """nn.Linear-style init, weights stored [in, out] (transposed vs PyTorch)."""
    def linear(key, fan_in, fan_out):
        kw, kb = jax.random.split(key)
        bound = 1.0 / jnp.sqrt(fan_in)
        w = jax.random.uniform(kw, (fan_in, fan_out), jnp.float32, -bound, bound)
        b = jax.random.uniform(kb, (1, fan_out), jnp.float32, -bound, bound)
        return w, b

    k1, k2, k3, k4 = jax.random.split(key, 4)
    w1, b1 = linear(k1, input_size, hidden_size)
    ws1, bs1 = linear(k2, hidden_size, sfc_size)
    ws2, bs2 = linear(k3, hidden_size, sfc_size)
    wo, bo = linear(k4, sfc_size, output_size)
    return {"w1": w1, "b1": b1, "ws1": ws1, "bs1": bs1,
            "ws2": ws2, "bs2": bs2, "wo": wo, "bo": bo}


def prepare_params(raw, mxu_dtype=jnp.bfloat16):
    """Fuse the two branch Linears and cast MXU operands; biases stay f32."""
    return {
        "w1": raw["w1"].astype(mxu_dtype),
        "b1": raw["b1"].astype(jnp.float32),
        "ws12": jnp.concatenate([raw["ws1"], raw["ws2"]], axis=1).astype(mxu_dtype),
        "bs12": jnp.concatenate([raw["bs1"], raw["bs2"]], axis=1).astype(jnp.float32),
        "wo": raw["wo"].astype(mxu_dtype),
        "bo": raw["bo"].astype(jnp.float32),
    }


def reference_forward_f32(x, raw):
    """Exact f32 semantics of the PyTorch module."""
    h = jnp.maximum(x @ raw["w1"] + raw["b1"], 0.0)
    o1 = jnp.maximum(h @ raw["ws1"] + raw["bs1"], 0.0)
    o2 = jnp.maximum(h @ raw["ws2"] + raw["bs2"], 0.0)
    out = o1 @ raw["wo"] + raw["bo"]
    return out, jnp.sum(o1), jnp.sum(o2), o1, o2


def reference_forward_matched(x, params, sfc_size, mxu_dtype=jnp.bfloat16):
    """Pure-JAX reference with the same bf16-operand / f32-accumulate scheme."""
    xd = x.astype(mxu_dtype)
    h = jnp.dot(xd, params["w1"], preferred_element_type=jnp.float32)
    h = jnp.maximum(h + params["b1"], 0.0)
    o12 = jnp.dot(h.astype(mxu_dtype), params["ws12"],
                  preferred_element_type=jnp.float32)
    o12 = jnp.maximum(o12 + params["bs12"], 0.0)
    o1, o2 = o12[:, :sfc_size], o12[:, sfc_size:]
    out = jnp.dot(o1.astype(mxu_dtype), params["wo"],
                  preferred_element_type=jnp.float32) + params["bo"]
    return out, jnp.sum(o1), jnp.sum(o2), o1, o2


# --------------------------------- demo ------------------------------------ #

if __name__ == "__main__":
    batch = 8
    input_size = 16
    hidden_size = 32
    sfc_size = 32
    output_size = 16

    key = jax.random.PRNGKey(0)
    kx, kp = jax.random.split(key)
    x = jax.random.normal(kx, (batch, input_size), jnp.float32)
    raw = init_params(kp, input_size, hidden_size, sfc_size, output_size)
    params = prepare_params(raw)

    result = nn_pathway_forward(x, params, sfc_size=sfc_size)
    result = jax.block_until_ready(result)

    # Tight check vs a reference using the identical bf16-MXU / f32-acc scheme.
    ref_m = reference_forward_matched(x, params, sfc_size)
    for a, b in zip(result, ref_m):
        assert jnp.allclose(a, b, atol=1e-2, rtol=1e-2), \
            "mismatch vs matched-precision reference"

    # Loose check vs exact f32 module semantics (bf16 operands change numerics).
    ref_f = reference_forward_f32(x, raw)
    for a, b in zip(result, ref_f):
        assert jnp.allclose(a, b, atol=5e-2, rtol=5e-2), \
            "mismatch vs f32 reference"

    print("KERNEL_OK")
</pallas_src>

<mosaic_0001>
module attributes {stable_mosaic.version = 11 : i64} {
  func.func @pathway_kernel(%arg0: i32, %arg1: memref<8x16xbf16, #tpu.memory_space<vmem>>, %arg2: memref<16x32xbf16, #tpu.memory_space<vmem>>, %arg3: memref<1x32xf32, #tpu.memory_space<vmem>>, %arg4: memref<32x64xbf16, #tpu.memory_space<vmem>>, %arg5: memref<1x64xf32, #tpu.memory_space<vmem>>, %arg6: memref<32x16xbf16, #tpu.memory_space<vmem>>, %arg7: memref<1x16xf32, #tpu.memory_space<vmem>>, %arg8: memref<8x80xf32, #tpu.memory_space<vmem>>) attributes {dimension_semantics = [#tpu.dimension_semantics<parallel>], iteration_bounds = array<i64: 1>, scalar_prefetch = 0 : i64, scratch_operands = 0 : i64, tpu.core_type = #tpu.core_type<tc>, window_params = [{transform_indices = @transform_0, window_bounds = array<i64: 8, 16>}, {pipeline_mode = #tpu.pipeline_mode<synchronous>, transform_indices = @transform_1, window_bounds = array<i64: 16, 32>}, {pipeline_mode = #tpu.pipeline_mode<synchronous>, transform_indices = @transform_2, window_bounds = array<i64: 1, 32>}, {pipeline_mode = #tpu.pipeline_mode<synchronous>, transform_indices = @transform_3, window_bounds = array<i64: 32, 64>}, {pipeline_mode = #tpu.pipeline_mode<synchronous>, transform_indices = @transform_4, window_bounds = array<i64: 1, 64>}, {pipeline_mode = #tpu.pipeline_mode<synchronous>, transform_indices = @transform_5, window_bounds = array<i64: 32, 16>}, {pipeline_mode = #tpu.pipeline_mode<synchronous>, transform_indices = @transform_6, window_bounds = array<i64: 1, 16>}, {transform_indices = @transform_7, window_bounds = array<i64: 8, 80>}]} {
    %c0 = arith.constant 0 : index
    %c0_0 = arith.constant 0 : index
    %0 = vector.load %arg1[%c0, %c0_0] : memref<8x16xbf16, #tpu.memory_space<vmem>>, vector<8x16xbf16>
    %c0_1 = arith.constant 0 : index
    %c0_2 = arith.constant 0 : index
    %1 = vector.load %arg2[%c0_1, %c0_2] : memref<16x32xbf16, #tpu.memory_space<vmem>>, vector<16x32xbf16>
    %cst = arith.constant dense<0.000000e+00> : vector<8x32xf32>
    %2 = tpu.matmul %0, %1, %cst {dimension_numbers = #tpu.dot_dimension_numbers<[1], [0], [0], [1], [0, 0, 1, 1], [], []>} : vector<8x16xbf16>, vector<16x32xbf16>, vector<8x32xf32> -> vector<8x32xf32>
    %c0_3 = arith.constant 0 : index
    %c0_4 = arith.constant 0 : index
    %3 = vector.load %arg3[%c0_3, %c0_4] : memref<1x32xf32, #tpu.memory_space<vmem>>, vector<1x32xf32>
    %4 = vector.broadcast %3 : vector<1x32xf32> to vector<8x32xf32>
    %5 = arith.addf %2, %4 : vector<8x32xf32>
    %cst_5 = arith.constant 0.000000e+00 : f32
    %6 = vector.broadcast %cst_5 : f32 to vector<8x32xf32>
    %7 = arith.maximumf %5, %6 : vector<8x32xf32>
    %8 = arith.truncf %7 : vector<8x32xf32> to vector<8x32xbf16>
    %c0_6 = arith.constant 0 : index
    %c0_7 = arith.constant 0 : index
    %9 = vector.load %arg4[%c0_6, %c0_7] : memref<32x64xbf16, #tpu.memory_space<vmem>>, vector<32x64xbf16>
    %cst_8 = arith.constant dense<0.000000e+00> : vector<8x64xf32>
    %10 = tpu.matmul %8, %9, %cst_8 {dimension_numbers = #tpu.dot_dimension_numbers<[1], [0], [0], [1], [0, 0, 1, 1], [], []>} : vector<8x32xbf16>, vector<32x64xbf16>, vector<8x64xf32> -> vector<8x64xf32>
    %c0_9 = arith.constant 0 : index
    %c0_10 = arith.constant 0 : index
    %11 = vector.load %arg5[%c0_9, %c0_10] : memref<1x64xf32, #tpu.memory_space<vmem>>, vector<1x64xf32>
    %12 = vector.broadcast %11 : vector<1x64xf32> to vector<8x64xf32>
    %13 = arith.addf %10, %12 : vector<8x64xf32>
    %cst_11 = arith.constant 0.000000e+00 : f32
    %14 = vector.broadcast %cst_11 : f32 to vector<8x64xf32>
    %15 = arith.maximumf %13, %14 : vector<8x64xf32>
    %16 = vector.extract_strided_slice %15 {offsets = [0, 0], sizes = [8, 32], strides = [1, 1]} : vector<8x64xf32> to vector<8x32xf32>
    %17 = arith.truncf %16 : vector<8x32xf32> to vector<8x32xbf16>
    %c0_12 = arith.constant 0 : index
    %c0_13 = arith.constant 0 : index
    %18 = vector.load %arg6[%c0_12, %c0_13] : memref<32x16xbf16, #tpu.memory_space<vmem>>, vector<32x16xbf16>
    %cst_14 = arith.constant dense<0.000000e+00> : vector<8x16xf32>
    %19 = tpu.matmul %17, %18, %cst_14 {dimension_numbers = #tpu.dot_dimension_numbers<[1], [0], [0], [1], [0, 0, 1, 1], [], []>} : vector<8x32xbf16>, vector<32x16xbf16>, vector<8x16xf32> -> vector<8x16xf32>
    %c0_15 = arith.constant 0 : index
    %c0_16 = arith.constant 0 : index
    %20 = vector.load %arg7[%c0_15, %c0_16] : memref<1x16xf32, #tpu.memory_space<vmem>>, vector<1x16xf32>
    %21 = vector.broadcast %20 : vector<1x16xf32> to vector<8x16xf32>
    %22 = arith.addf %19, %21 : vector<8x16xf32>
    %23 = tpu.concatenate %22, %15 in 1 : vector<8x16xf32>, vector<8x64xf32> -> vector<8x80xf32>
    %c0_17 = arith.constant 0 : index
    %c0_18 = arith.constant 0 : index
    %24 = vector.load %arg8[%c0_17, %c0_18] : memref<8x80xf32, #tpu.memory_space<vmem>>, vector<8x80xf32>
    tpu.vector_store %arg8[%c0_17, %c0_18], %23 {strides = array<i32>} : memref<8x80xf32, #tpu.memory_space<vmem>>, vector<8x80xf32>,
    return
  }
  func.func @transform_0(%arg0: i32) -> (i32, i32) {
    %c0_i32 = arith.constant 0 : i32
    %c0_i32_0 = arith.constant 0 : i32
    return %arg0, %c0_i32 : i32, i32
  }
  func.func @transform_1(%arg0: i32) -> (i32, i32) {
    %c0_i32 = arith.constant 0 : i32
    %c0_i32_0 = arith.constant 0 : i32
    %c0_i32_1 = arith.constant 0 : i32
    return %c0_i32, %c0_i32_0 : i32, i32
  }
  func.func @transform_2(%arg0: i32) -> (i32, i32) {
    %c0_i32 = arith.constant 0 : i32
    %c0_i32_0 = arith.constant 0 : i32
    %c0_i32_1 = arith.constant 0 : i32
    return %c0_i32, %c0_i32_0 : i32, i32
  }
  func.func @transform_3(%arg0: i32) -> (i32, i32) {
    %c0_i32 = arith.constant 0 : i32
    %c0_i32_0 = arith.constant 0 : i32
    %c0_i32_1 = arith.constant 0 : i32
    return %c0_i32, %c0_i32_0 : i32, i32
  }
  func.func @transform_4(%arg0: i32) -> (i32, i32) {
    %c0_i32 = arith.constant 0 : i32
    %c0_i32_0 = arith.constant 0 : i32
    %c0_i32_1 = arith.constant 0 : i32
    return %c0_i32, %c0_i32_0 : i32, i32
  }
  func.func @transform_5(%arg0: i32) -> (i32, i32) {
    %c0_i32 = arith.constant 0 : i32
    %c0_i32_0 = arith.constant 0 : i32
    %c0_i32_1 = arith.constant 0 : i32
    return %c0_i32, %c0_i32_0 : i32, i32
  }
  func.func @transform_6(%arg0: i32) -> (i32, i32) {
    %c0_i32 = arith.constant 0 : i32
    %c0_i32_0 = arith.constant 0 : i32
    %c0_i32_1 = arith.constant 0 : i32
    return %c0_i32, %c0_i32_0 : i32, i32
  }
  func.func @transform_7(%arg0: i32) -> (i32, i32) {
    %c0_i32 = arith.constant 0 : i32
    %c0_i32_0 = arith.constant 0 : i32
    return %arg0, %c0_i32 : i32, i32
  }
}

</mosaic_0001>

<bundles_post_ra>
// kernel: tpu_custom_call.1
= control target key start
LH: loop header
LB: loop body
LE: loop exit
PB: predicated region body
PF: predicated region fallthrough
CT: control target
= control target key end

     0   :  { %12 = vsyncpa [#allocation3], 0  ;;  %s470_s0 = inlined_call_operand.hbm [shape: bf16[8,16], index: 0, kind: input, shape index: {}]   ;;  %s471_s1 = inlined_call_operand.vmem [shape: bf16[16,32], index: 1, kind: input, shape index: {}]   ;;  %s472_s2 = inlined_call_operand.vmem [shape: f32[1,32], index: 2, kind: input, shape index: {}]   ;;  %s473_s3 = inlined_call_operand.vmem [shape: bf16[32,64], index: 3, kind: input, shape index: {}]   ;;  %s474_s4 = inlined_call_operand.hbm [shape: f32[1,64], index: 4, kind: input, shape index: {}]   ;;  %s475_s5 = inlined_call_operand.vmem [shape: bf16[32,16], index: 5, kind: input, shape index: {}]   ;;  %s476_s6 = inlined_call_operand.vmem [shape: f32[1,16], index: 6, kind: input, shape index: {}]   ;;  %s477_s7 = inlined_call_operand.hbm [shape: f32[8,80], index: 7, kind: output, shape index: {}]  }
   0x1   :  { %13 = vsyncpa [#allocation6], 0 }
   0x2   :  { %14 = vsyncpa [#allocation4], 0  ;;  %s390_s24 = smov [#allocation2]   ;;  %s391_s26 = smov [#allocation5]  }
   0x3   :  { %s21_s25 = sshll.u32 %s390_s24, 4  ;;  %s37_s27 = sshll.u32 %s391_s26, 4  ;;  %s22_s25 = int_to_ptr.vmem [resolvable:$true] %s21_s25  ;;  %s38_s27 = int_to_ptr.vmem [resolvable:$true] %s37_s27 }
   0x4   :  { %s332_s28 = scalar_lea.vmem %s22_s25, 64  ;;  %p337_p1 = scmp.lt.s32.totalorder %s22_s25, %s22_s25 }
   0x5   :  { %p333_p0 = scmp.ne.s32.totalorder %s22_s25, %s332_s28  ;;  %p338_p2 = scmp.lt.s32.totalorder %s332_s28, %s332_s28 }
   0x7   :  { %p339_p3 = por %p338_p2, %p337_p1 }
   0x9   :  { %p340_p4 = pnand %p339_p3, %p333_p0 }
   0xb   :  { %343 = shalt.err (!%p340_p4)
}
   0xc   :  { %24 = dma.hbm_to_vmem [thread:$0]  %s470_s0, 64, %s22_s25, [#allocation3]  }
   0xd   :  { %s352_s8 = scalar_lea.vmem %s38_s27, 16  ;;  %s356_s9 = scalar_lea.vmem %s38_s27, 32 }
   0xe   :  { %p353_p5 = scmp.ne.s32.totalorder %s38_s27, %s352_s8  ;;  %p357_p6 = scmp.lt.s32.totalorder %s38_s27, %s38_s27 }
   0xf   :  { %p358_p7 = scmp.lt.s32.totalorder %s356_s9, %s352_s8 }
  0x11   :  { %p359_p8 = por %p358_p7, %p357_p6 }
  0x13   :  { %p360_p9 = pnand %p359_p8, %p353_p5 }
  0x15   :  { %363 = shalt.err (!%p360_p9)
}
  0x16   :  { %40 = dma.hbm_to_vmem [thread:$0]  %s474_s4, 16, %s38_s27, [#allocation6]  }
  0x17   :  { %384 = dma.done.wait [#allocation3], 64  }
  0x18   :  { %385 = vsyncadd [#allocation3], 4294967232 }
  0x19   :  { %386 = dma.done.wait [#allocation6], 16  }
  0x1a   :  { %387 = vsyncadd [#allocation6], 4294967280  ;;  %v392_v0 = vmov 0.0   ;;  %vm393_vm0 = vmmov 0   ;;  %v319_v1 = vld [vmem:[%s471_s1] sm:$0xff]   ;;  %vm68_vm1 = vcmask 130048  }
  0x1b   :  { %291 = vmatprep.subr.bf16.mxu0 %v392_v0  ;;  %293 = vmatprep.mubr.msk.bf16.mxu0 %vm393_vm0, %v392_v0  ;;  %v52_v2 = vld [vmem:[#allocation2] sm:$0xf]  ;;  %v320_v3 = vld [vmem:[%s473_s3 + $0x8] sm:$0xff]   ;;  %vm137_vm2 = vcmask 261120   ;;  %v275_v15 = vld [vmem:[#allocation5] ss:$0 sm:$0xff] }
  0x1c   :  { %297 = vmatprep.subr.bf16.mxu1 %v392_v0  ;;  %301 = vmatprep.mubr.msk.bf16.mxu1 %vm393_vm0, %v392_v0  ;;  %v321_v4 = vld [vmem:[%s473_s3] sm:$0xff]   ;;  %v322_v5 = vld [vmem:[%s475_s5 + $0x8] sm:$0xff]   ;;  %s395_s22 = smov [#allocation7]   ;;  %vm254_vm3 = vcmask 654336  }
  0x1d   :  { %292 = vmatpush3.bf16.msra.mxu0 %v319_v1  ;;  %298 = vmatpush3.bf16.msra.mxu1 %v320_v3  ;;  %v272_v6 = vld [vmem:[%s472_s2] ss:$0 sm:$0xff]  ;;  %s394_s2 = smov 16   ;;  %s262_s23 = sshll.u32 %s395_s22, 4  ;;  %s263_s23 = int_to_ptr.vmem [resolvable:$true] %s262_s23 }
  0x1e   :  { %305 = vmatprep.subr.bf16.mxu0 %v392_v0  ;;  %299 = vmatprep.subr.bf16.mxu1 %v392_v0  ;;  %v323_v14 = vld [vmem:[%s475_s5] sm:$0xff]   ;;  %s364_s5 = scalar_lea.vmem %s263_s23, 128  ;;  %p369_p11 = scmp.lt.s32.totalorder %s263_s23, %s263_s23 }
  0x1f   :  { %v279_v23 = vld [vmem:[%s476_s6] ss:$0 sm:$0xff]  ;;  %p365_p10 = scmp.ne.s32.totalorder %s263_s23, %s364_s5  ;;  %p370_p12 = scmp.lt.s32.totalorder %s364_s5, %s364_s5 }
  0x20   :  { %294 = vmatmul.mubr.msk.bf16.vlgmr.msra.gmra.mxu0 %vm68_vm1, %v52_v2 }
  0x21   :  { %309 = vmatprep.mubr.msk.bf16.mxu0 %vm393_vm0, %v392_v0  ;;  %300 = vmatpush3.bf16.msra.mxu1 %v321_v4  ;;  %p371_p13 = por %p370_p12, %p369_p11 }
  0x22   :  { %306 = vmatpush3.bf16.msra.mxu0 %v322_v5 }
  0x23   :  { %307 = vmatprep.subr.bf16.mxu0 %v392_v0  ;;  %p372_p0 = pnand %p371_p13, %p365_p10 }
  0x26   :  { %308 = vmatpush3.bf16.msra.mxu0 %v323_v14 }
  0xe0   :  { %v106_v7 = vpop.f32.mrf.mxu0 }
  0xe1   :  { %v107_v8 = vadd.f32 %v272_v6, %v106_v7 }
  0xe2   :  { %v295_v9 = vpop.f32.mrf.mxu0 }
  0xe3   :  { %v112_v10 = vmax.f32 %v107_v8, 0.0 }
  0xe4   :  { %v109_v11 = vpop.f32.mrf.mxu0 }
  0xe5   :  { %v113_v12 = vpack.c.bf16 %v112_v10, %v112_v10 }
  0xe6   :  { %v296_v13 = vpop.f32.mrf.mxu0 }
  0xe7   :  { %302 = vmatmul.mubr.msk.bf16.vlgmr.msra.gmra.mxu1 %vm137_vm2, %v113_v12 }
 0x1a7   :  { %v175_v16 = vpop.f32.mrf.mxu1 }
 0x1a8   :  { %v176_v17 = vadd.f32 %v275_v15, %v175_v16 }
 0x1a9   :  { %v303_v18 = vpop.f32.mrf.mxu1 }
 0x1aa   :  { %v181_v19 = vmax.f32 %v176_v17, 0.0 }
 0x1ab   :  { %v178_v20 = vpop.f32.mrf.mxu1 }
 0x1ac   :  { %v182_v21 = vpack.c.bf16 %v181_v19, %v181_v19  ;;  %250 = vrot.lane.b32.xlu0 %v181_v19, %s394_s2 }
 0x1ad   :  { %v304_v22 = vpop.f32.mrf.mxu1 }
 0x1ae   :  { %310 = vmatmul.mubr.msk.bf16.vlgmr.msra.gmra.mxu0 %vm137_vm2, %v182_v21 }
 0x21e   :  { %v251_v26 = vpop.permute.xlu0 %250 }
 0x26e   :  { %v243_v24 = vpop.f32.mrf.mxu0 }
 0x26f   :  { %v244_v25 = vadd.f32 %v279_v23, %v243_v24 }
 0x270   :  { %v311_v27 = vpop.f32.mrf.mxu0 }
 0x271   :  { %v253_v28 = vsel %vm68_vm1, %v244_v25, %v251_v26 }
 0x272   :  { %v246_v29 = vpop.f32.mrf.mxu0  ;;  %255 = vst.msk [vmem:[#allocation7] sm:$0xff] %vm254_vm3, %v253_v28 }
 0x273   :  { %375 = shalt.err (!%p372_p0)
}
 0x274   :  { %265 = dma.vmem_to_hbm [thread:$0]  %s263_s23, 128, %s477_s7, [#allocation4]   ;;  %v312_v30 = vpop.f32.mrf.mxu0 }
 0x275   :  { %388 = dma.done.wait [#allocation4], 128  }
 0x276   :  { %389 = vsyncadd [#allocation4], 4294967168 }
 0x277   :  { %269 = vsyncpa [#allocation3], 1 }
 0x278   :  { %270 = vsyncpa [#allocation6], 1 }
 0x279   :  { %271 = vsyncpa [#allocation4], 1 }

</bundles_post_ra>
